<compile_context>
chip_gen: v7x
topology: tpu7x:2x2x1
jax: 0.10.0
libtpu: 0.0.40
codegen_flags: <defaults>
</compile_context>

<pallas_src>
import functools

import jax
import jax.numpy as jnp
from jax.experimental import pallas as pl
from jax.experimental.pallas import tpu as pltpu


# --------------------------------------------------------------------------
# Kernel
# --------------------------------------------------------------------------
def _conv1x1(w_ref, b_ref, x, small_c, matmul_dtype):
    """out[co, p] = sum_ci W[co, ci] * x[ci, p] + b[co]   (f32 result)."""
    b = b_ref[...].astype(jnp.float32)                         # (Co, 1)
    w = w_ref[...]
    if small_c:
        # Tiny channel counts: C broadcast multiply-adds on the VPU; pixels
        # stay on the 128-lane axis so every lane is busy.
        wf = w.astype(jnp.float32)                              # (Co, Ci)
        xf = x.astype(jnp.float32)                              # (Ci, T)
        acc = jnp.broadcast_to(b, (wf.shape[0], xf.shape[-1]))
        for ci in range(wf.shape[1]):                           # unrolled, Ci tiny
            acc = acc + wf[:, ci:ci + 1] * xf[ci:ci + 1, :]
        return acc
    # MXU path; optional bf16 operands (cast in-kernel only), f32 accumulation.
    if matmul_dtype is not None:
        w = w.astype(matmul_dtype)
        x = x.astype(matmul_dtype)
    return jnp.dot(w, x, preferred_element_type=jnp.float32) + b


def intragate_kernel(lat_ref, aux_ref, w1_ref, b1_ref, wa_ref, ba_ref, out_ref,
                     *, small_c, matmul_dtype):
    # lat/aux/out blocks: (C, T)  -- pixels on lanes, channels on sublanes.
    c = lat_ref.shape[0]
    lat = lat_ref[...]
    aux = aux_ref[...]
    l = _conv1x1(w1_ref, b1_ref, lat, small_c, matmul_dtype)    # (C, T)  = w_1(latent)
    ag = _conv1x1(wa_ref, ba_ref, aux, small_c, matmul_dtype)   # (2C, T) = fused aux branch
    a = ag[:c, :]                                               # w_2(aux)
    g = ag[c:, :]                                               # w_3(w_2(aux)), folded
    attn = jax.nn.sigmoid(l * a)
    out_ref[...] = (l * attn + g).astype(out_ref.dtype)


# --------------------------------------------------------------------------
# VMEM budgeting / tile choice
# --------------------------------------------------------------------------
def _pad_sublane(c, itemsize):
    """Round channel count up to the sublane packing multiple for `itemsize`."""
    mult = 8 * max(1, 4 // int(itemsize))
    return ((c + mult - 1) // mult) * mult


def _vmem_budget():
    """(working-set budget, scoped vmem limit) derived from the chip."""
    cap = 64 << 20                      # conservative default (v7x per-TC VMEM)
    try:
        cap = int(pltpu.get_tpu_info().vmem_capacity_bytes)
    except Exception:
        pass
    budget = int(cap * 0.45)
    limit = min(int(cap * 0.90), 128 << 20)
    return budget, limit


def _choose_tile(hw, c, in_itemsize, out_itemsize, budget, n, min_grid_steps=8):
    """Largest multiple-of-128 pixel tile whose pipelined working set fits the
    budget (incl. f32 intermediates + sublane padding), with enough grid steps
    left for megacore sharding."""
    if hw <= 128:
        return hw                                     # full-extent block is legal
    cin = _pad_sublane(c, in_itemsize)
    cout = _pad_sublane(c, out_itemsize)
    c32 = _pad_sublane(c, 4)
    c2_in = _pad_sublane(2 * c, in_itemsize)
    c2_32 = _pad_sublane(2 * c, 4)

    # Bytes per pixel column: lat+aux inputs (x2 bufs), output (x2 bufs),
    # plus f32 intermediates (l, ag, attn, temps).
    per_t = (2 * 2 * cin * in_itemsize
             + 2 * cout * out_itemsize
             + 6 * c32 * 4)
    # Grid-invariant weights/biases (worst case: double-buffered f32, lane-padded).
    fixed = 2 * ((c32 + c2_32) * max(c, 128) * 4 + (c32 + c2_32) * 128 * 4)

    hw_cap = (hw // 128) * 128                        # largest mult-of-128 <= hw
    t = (budget - fixed) // max(per_t, 1)
    t = max(128, min(int(t), hw_cap) // 128 * 128)

    # Keep >= min_grid_steps grid points so v7x's two TensorCores both get work.
    while t > 512 and n * pl.cdiv(hw, t) < min_grid_steps:
        t = max(512, (t // 2) // 128 * 128)
    return t


# --------------------------------------------------------------------------
# Wrapper
# --------------------------------------------------------------------------
def intragate_pallas(aux_nchw, latent_nchw, params, *, matmul_dtype=None,
                     out_dtype=None, min_grid_steps=8):
    """aux_nchw, latent_nchw: (N, C, H, W). Returns (N, C, H, W)."""
    w1, b1, w2, b2, w3, b3 = params
    n, c, h, w = aux_nchw.shape
    hw = h * w
    out_dtype = latent_nchw.dtype if out_dtype is None else out_dtype

    # Fold w_3 into the aux branch and fuse with w_2 into a single (2C, C) conv:
    #   rows [0, C)  : a = W2 x + b2
    #   rows [C, 2C) : g = (W3 W2) x + (W3 b2 + b3)
    hi = jax.lax.Precision.HIGHEST
    w23 = jnp.dot(w3, w2, precision=hi)
    b23 = jnp.dot(w3, b2.reshape(c, 1), precision=hi) + b3.reshape(c, 1)
    wa = jnp.concatenate([w2, w23], axis=0)                          # (2C, C)
    ba = jnp.concatenate([b2.reshape(c, 1), b23], axis=0)            # (2C, 1)
    b1c = b1.reshape(c, 1)

    # NCHW -> (N, C, H*W): pure reshape, no transpose, no extra HBM pass.
    lat3 = latent_nchw.reshape(n, c, hw)
    aux3 = aux_nchw.reshape(n, c, hw)

    in_itemsize = jnp.dtype(lat3.dtype).itemsize
    out_itemsize = jnp.dtype(out_dtype).itemsize

    budget, vmem_limit = _vmem_budget()
    t_hw = _choose_tile(hw, c, in_itemsize, out_itemsize, budget, n,
                        min_grid_steps=min_grid_steps)
    grid = (n, pl.cdiv(hw, t_hw))
    small_c = c <= 8

    m = n * hw
    cost = pl.CostEstimate(
        flops=6 * m * c * c + 6 * m * c,
        transcendentals=m * c,
        bytes_accessed=(2 * in_itemsize + out_itemsize) * m * c + 3 * c * c * 4,
    )

    def _run(single_buffer_weights):
        wkw = {"pipeline_mode": pl.Buffered(1)} if single_buffer_weights else {}
        pix_spec = pl.BlockSpec((None, c, t_hw), lambda i, j: (i, 0, j))
        w1_spec = pl.BlockSpec((c, c), lambda i, j: (0, 0), **wkw)
        b1_spec = pl.BlockSpec((c, 1), lambda i, j: (0, 0), **wkw)
        wa_spec = pl.BlockSpec((2 * c, c), lambda i, j: (0, 0), **wkw)
        ba_spec = pl.BlockSpec((2 * c, 1), lambda i, j: (0, 0), **wkw)
        return pl.pallas_call(
            functools.partial(intragate_kernel, small_c=small_c,
                              matmul_dtype=matmul_dtype),
            out_shape=jax.ShapeDtypeStruct((n, c, hw), out_dtype),
            grid=grid,
            in_specs=[pix_spec, pix_spec, w1_spec, b1_spec, wa_spec, ba_spec],
            out_specs=pix_spec,
            compiler_params=pltpu.CompilerParams(
                dimension_semantics=("parallel", "parallel"),
                vmem_limit_bytes=int(vmem_limit)),
            cost_estimate=cost,
        )(lat3, aux3, w1, b1c, wa, ba)

    try:
        # Weights/biases are grid-invariant: single-buffer them to free VMEM
        # for larger pixel tiles (matters most on v7x's 64 MiB/TC).
        out3 = _run(single_buffer_weights=True)
    except Exception:
        # Fallback for jax versions without pl.Buffered(1) support on TPU.
        out3 = _run(single_buffer_weights=False)

    # (N, C, H*W) -> (N, C, H, W): pure reshape.
    return out3.reshape(n, c, h, w)


# --------------------------------------------------------------------------
# Reference & test
# --------------------------------------------------------------------------
def make_params(key, channels):
    """Deterministic Conv2d(k=1) parameters: W as (C_out, C_in), b as (C,)."""
    ks = jax.random.split(key, 6)
    scale = 1.0 / float(channels) ** 0.5

    def u(k, shape):
        return jax.random.uniform(k, shape, jnp.float32, -scale, scale)

    w1, b1 = u(ks[0], (channels, channels)), u(ks[1], (channels,))
    w2, b2 = u(ks[2], (channels, channels)), u(ks[3], (channels,))
    w3, b3 = u(ks[4], (channels, channels)), u(ks[5], (channels,))
    return w1, b1, w2, b2, w3, b3


def _conv1x1_ref(x_nchw, w, b):
    return (jnp.einsum('oi,nihw->nohw', w, x_nchw,
                       precision=jax.lax.Precision.HIGHEST)
            + b.reshape(1, -1, 1, 1))


def intragate_ref(aux, latent, params):
    """Pure-JAX reference mirroring the PyTorch forward (no W3@W2 folding)."""
    w1, b1, w2, b2, w3, b3 = params
    l = _conv1x1_ref(latent, w1, b1)
    a = _conv1x1_ref(aux, w2, b2)
    attn = jax.nn.sigmoid(l * a)
    return l * attn + _conv1x1_ref(a, w3, b3)


if __name__ == "__main__":
    key = jax.random.PRNGKey(0)
    k_aux, k_lat, k_par = jax.random.split(key, 3)

    # ---- C=4 (small-C / VPU path), f32, hw = 256 --------------------------
    N, C, H, W = 2, 4, 16, 16
    aux = jax.random.normal(k_aux, (N, C, H, W), jnp.float32)
    latent = jax.random.normal(k_lat, (N, C, H, W), jnp.float32)
    params = make_params(k_par, C)
    ref = intragate_ref(aux, latent, params)
    out = jax.block_until_ready(intragate_pallas(aux, latent, params))
    assert out.shape == (N, C, H, W)
    assert jnp.allclose(out, ref, atol=1e-4, rtol=1e-4)

    # ---- C=8, non-multiple-of-128 H*W (padded trailing block), f32 --------
    N2, C2, H2, W2 = 1, 8, 10, 15                      # hw = 150
    aux2 = jax.random.normal(jax.random.fold_in(k_aux, 1), (N2, C2, H2, W2))
    lat2 = jax.random.normal(jax.random.fold_in(k_lat, 1), (N2, C2, H2, W2))
    params2 = make_params(jax.random.fold_in(k_par, 1), C2)
    ref2 = intragate_ref(aux2, lat2, params2)
    out2 = jax.block_until_ready(intragate_pallas(aux2, lat2, params2))
    assert jnp.allclose(out2, ref2, atol=1e-4, rtol=1e-4)

    # ---- C=128 (MXU path, fused (2C,C) aux matmul), f32 -------------------
    N3, C3, H3, W3 = 2, 128, 16, 16
    aux3 = jax.random.normal(jax.random.fold_in(k_aux, 2), (N3, C3, H3, W3))
    lat3 = jax.random.normal(jax.random.fold_in(k_lat, 2), (N3, C3, H3, W3))
    params3 = make_params(jax.random.fold_in(k_par, 2), C3)
    ref3 = intragate_ref(aux3, lat3, params3)
    out3 = jax.block_until_ready(intragate_pallas(aux3, lat3, params3))
    assert jnp.allclose(out3, ref3, atol=2e-2, rtol=2e-2)

    # ---- C=128 with in-kernel bf16 matmul operands (loose tolerance) ------
    out3_bf16 = jax.block_until_ready(
        intragate_pallas(aux3, lat3, params3, matmul_dtype=jnp.bfloat16))
    assert jnp.allclose(out3_bf16, ref3, atol=1.5e-1, rtol=1.5e-1)

    print("KERNEL_OK")
</pallas_src>

<mosaic_0001>
module attributes {stable_mosaic.version = 11 : i64} {
  func.func @intragate_kernel(%arg0: i32, %arg1: i32, %arg2: memref<1x4x256xf32, #tpu.memory_space<vmem>>, %arg3: memref<1x4x256xf32, #tpu.memory_space<vmem>>, %arg4: memref<4x4xf32, #tpu.memory_space<vmem>>, %arg5: memref<4x1xf32, #tpu.memory_space<vmem>>, %arg6: memref<8x4xf32, #tpu.memory_space<vmem>>, %arg7: memref<8x1xf32, #tpu.memory_space<vmem>>, %arg8: memref<1x4x256xf32, #tpu.memory_space<vmem>>) attributes {dimension_semantics = [#tpu.dimension_semantics<parallel>, #tpu.dimension_semantics<parallel>], iteration_bounds = array<i64: 2, 1>, scalar_prefetch = 0 : i64, scratch_operands = 0 : i64, tpu.core_type = #tpu.core_type<tc>, window_params = [{transform_indices = @transform_0, window_bounds = array<i64: 1, 4, 256>}, {transform_indices = @transform_1, window_bounds = array<i64: 1, 4, 256>}, {pipeline_mode = #tpu.pipeline_mode<synchronous>, transform_indices = @transform_2, window_bounds = array<i64: 4, 4>}, {pipeline_mode = #tpu.pipeline_mode<synchronous>, transform_indices = @transform_3, window_bounds = array<i64: 4, 1>}, {pipeline_mode = #tpu.pipeline_mode<synchronous>, transform_indices = @transform_4, window_bounds = array<i64: 8, 4>}, {pipeline_mode = #tpu.pipeline_mode<synchronous>, transform_indices = @transform_5, window_bounds = array<i64: 8, 1>}, {transform_indices = @transform_6, window_bounds = array<i64: 1, 4, 256>}]} {
    %c0 = arith.constant 0 : index
    %c0_0 = arith.constant 0 : index
    %c0_1 = arith.constant 0 : index
    %0 = vector.load %arg2[%c0, %c0_0, %c0_1] : memref<1x4x256xf32, #tpu.memory_space<vmem>>, vector<1x4x256xf32>
    %1 = vector.shape_cast %0 : vector<1x4x256xf32> to vector<4x256xf32>
    %c0_2 = arith.constant 0 : index
    %c0_3 = arith.constant 0 : index
    %c0_4 = arith.constant 0 : index
    %2 = vector.load %arg3[%c0_2, %c0_3, %c0_4] : memref<1x4x256xf32, #tpu.memory_space<vmem>>, vector<1x4x256xf32>
    %3 = vector.shape_cast %2 : vector<1x4x256xf32> to vector<4x256xf32>
    %c0_5 = arith.constant 0 : index
    %c0_6 = arith.constant 0 : index
    %4 = vector.load %arg5[%c0_5, %c0_6] : memref<4x1xf32, #tpu.memory_space<vmem>>, vector<4x1xf32>
    %c0_7 = arith.constant 0 : index
    %c0_8 = arith.constant 0 : index
    %5 = vector.load %arg4[%c0_7, %c0_8] : memref<4x4xf32, #tpu.memory_space<vmem>>, vector<4x4xf32>
    %6 = vector.shape_cast %4 : vector<4x1xf32> to vector<4x1xf32>
    %7 = vector.broadcast %6 : vector<4x1xf32> to vector<4x256xf32>
    %8 = vector.extract_strided_slice %5 {offsets = [0, 0], sizes = [4, 1], strides = [1, 1]} : vector<4x4xf32> to vector<4x1xf32>
    %9 = vector.extract_strided_slice %1 {offsets = [0, 0], sizes = [1, 256], strides = [1, 1]} : vector<4x256xf32> to vector<1x256xf32>
    %10 = vector.broadcast %8 : vector<4x1xf32> to vector<4x256xf32>
    %11 = vector.broadcast %9 : vector<1x256xf32> to vector<4x256xf32>
    %12 = arith.mulf %10, %11 : vector<4x256xf32>
    %13 = arith.addf %7, %12 : vector<4x256xf32>
    %14 = vector.extract_strided_slice %5 {offsets = [0, 1], sizes = [4, 1], strides = [1, 1]} : vector<4x4xf32> to vector<4x1xf32>
    %15 = vector.extract_strided_slice %1 {offsets = [1, 0], sizes = [1, 256], strides = [1, 1]} : vector<4x256xf32> to vector<1x256xf32>
    %16 = vector.broadcast %14 : vector<4x1xf32> to vector<4x256xf32>
    %17 = vector.broadcast %15 : vector<1x256xf32> to vector<4x256xf32>
    %18 = arith.mulf %16, %17 : vector<4x256xf32>
    %19 = arith.addf %13, %18 : vector<4x256xf32>
    %20 = vector.extract_strided_slice %5 {offsets = [0, 2], sizes = [4, 1], strides = [1, 1]} : vector<4x4xf32> to vector<4x1xf32>
    %21 = vector.extract_strided_slice %1 {offsets = [2, 0], sizes = [1, 256], strides = [1, 1]} : vector<4x256xf32> to vector<1x256xf32>
    %22 = vector.broadcast %20 : vector<4x1xf32> to vector<4x256xf32>
    %23 = vector.broadcast %21 : vector<1x256xf32> to vector<4x256xf32>
    %24 = arith.mulf %22, %23 : vector<4x256xf32>
    %25 = arith.addf %19, %24 : vector<4x256xf32>
    %26 = vector.extract_strided_slice %5 {offsets = [0, 3], sizes = [4, 1], strides = [1, 1]} : vector<4x4xf32> to vector<4x1xf32>
    %27 = vector.extract_strided_slice %1 {offsets = [3, 0], sizes = [1, 256], strides = [1, 1]} : vector<4x256xf32> to vector<1x256xf32>
    %28 = vector.broadcast %26 : vector<4x1xf32> to vector<4x256xf32>
    %29 = vector.broadcast %27 : vector<1x256xf32> to vector<4x256xf32>
    %30 = arith.mulf %28, %29 : vector<4x256xf32>
    %31 = arith.addf %25, %30 : vector<4x256xf32>
    %c0_9 = arith.constant 0 : index
    %c0_10 = arith.constant 0 : index
    %32 = vector.load %arg7[%c0_9, %c0_10] : memref<8x1xf32, #tpu.memory_space<vmem>>, vector<8x1xf32>
    %c0_11 = arith.constant 0 : index
    %c0_12 = arith.constant 0 : index
    %33 = vector.load %arg6[%c0_11, %c0_12] : memref<8x4xf32, #tpu.memory_space<vmem>>, vector<8x4xf32>
    %34 = vector.shape_cast %32 : vector<8x1xf32> to vector<8x1xf32>
    %35 = vector.broadcast %34 : vector<8x1xf32> to vector<8x256xf32>
    %36 = vector.extract_strided_slice %33 {offsets = [0, 0], sizes = [8, 1], strides = [1, 1]} : vector<8x4xf32> to vector<8x1xf32>
    %37 = vector.extract_strided_slice %3 {offsets = [0, 0], sizes = [1, 256], strides = [1, 1]} : vector<4x256xf32> to vector<1x256xf32>
    %38 = vector.broadcast %36 : vector<8x1xf32> to vector<8x256xf32>
    %39 = vector.broadcast %37 : vector<1x256xf32> to vector<8x256xf32>
    %40 = arith.mulf %38, %39 : vector<8x256xf32>
    %41 = arith.addf %35, %40 : vector<8x256xf32>
    %42 = vector.extract_strided_slice %33 {offsets = [0, 1], sizes = [8, 1], strides = [1, 1]} : vector<8x4xf32> to vector<8x1xf32>
    %43 = vector.extract_strided_slice %3 {offsets = [1, 0], sizes = [1, 256], strides = [1, 1]} : vector<4x256xf32> to vector<1x256xf32>
    %44 = vector.broadcast %42 : vector<8x1xf32> to vector<8x256xf32>
    %45 = vector.broadcast %43 : vector<1x256xf32> to vector<8x256xf32>
    %46 = arith.mulf %44, %45 : vector<8x256xf32>
    %47 = arith.addf %41, %46 : vector<8x256xf32>
    %48 = vector.extract_strided_slice %33 {offsets = [0, 2], sizes = [8, 1], strides = [1, 1]} : vector<8x4xf32> to vector<8x1xf32>
    %49 = vector.extract_strided_slice %3 {offsets = [2, 0], sizes = [1, 256], strides = [1, 1]} : vector<4x256xf32> to vector<1x256xf32>
    %50 = vector.broadcast %48 : vector<8x1xf32> to vector<8x256xf32>
    %51 = vector.broadcast %49 : vector<1x256xf32> to vector<8x256xf32>
    %52 = arith.mulf %50, %51 : vector<8x256xf32>
    %53 = arith.addf %47, %52 : vector<8x256xf32>
    %54 = vector.extract_strided_slice %33 {offsets = [0, 3], sizes = [8, 1], strides = [1, 1]} : vector<8x4xf32> to vector<8x1xf32>
    %55 = vector.extract_strided_slice %3 {offsets = [3, 0], sizes = [1, 256], strides = [1, 1]} : vector<4x256xf32> to vector<1x256xf32>
    %56 = vector.broadcast %54 : vector<8x1xf32> to vector<8x256xf32>
    %57 = vector.broadcast %55 : vector<1x256xf32> to vector<8x256xf32>
    %58 = arith.mulf %56, %57 : vector<8x256xf32>
    %59 = arith.addf %53, %58 : vector<8x256xf32>
    %60 = vector.extract_strided_slice %59 {offsets = [0, 0], sizes = [4, 256], strides = [1, 1]} : vector<8x256xf32> to vector<4x256xf32>
    %61 = vector.extract_strided_slice %59 {offsets = [4, 0], sizes = [4, 256], strides = [1, 1]} : vector<8x256xf32> to vector<4x256xf32>
    %62 = arith.mulf %31, %60 : vector<4x256xf32>
    %63 = arith.negf %62 : vector<4x256xf32>
    %64 = math.exp %63 : vector<4x256xf32>
    %cst = arith.constant 1.000000e+00 : f32
    %65 = vector.broadcast %cst : f32 to vector<4x256xf32>
    %66 = arith.addf %65, %64 : vector<4x256xf32>
    %67 = arith.divf %65, %66 : vector<4x256xf32>
    %68 = arith.mulf %31, %67 : vector<4x256xf32>
    %69 = arith.addf %68, %61 : vector<4x256xf32>
    %c0_13 = arith.constant 0 : index
    %c0_14 = arith.constant 0 : index
    %c0_15 = arith.constant 0 : index
    %70 = vector.load %arg8[%c0_13, %c0_14, %c0_15] : memref<1x4x256xf32, #tpu.memory_space<vmem>>, vector<1x4x256xf32>
    %71 = vector.shape_cast %70 : vector<1x4x256xf32> to vector<4x256xf32>
    %72 = vector.shape_cast %69 : vector<4x256xf32> to vector<1x4x256xf32>
    tpu.vector_store %arg8[%c0_13, %c0_14, %c0_15], %72 {strides = array<i32>} : memref<1x4x256xf32, #tpu.memory_space<vmem>>, vector<1x4x256xf32>,
    return
  }
  func.func @transform_0(%arg0: i32, %arg1: i32) -> (i32, i32, i32) {
    %c0_i32 = arith.constant 0 : i32
    %c0_i32_0 = arith.constant 0 : i32
    return %arg0, %c0_i32, %arg1 : i32, i32, i32
  }
  func.func @transform_1(%arg0: i32, %arg1: i32) -> (i32, i32, i32) {
    %c0_i32 = arith.constant 0 : i32
    %c0_i32_0 = arith.constant 0 : i32
    return %arg0, %c0_i32, %arg1 : i32, i32, i32
  }
  func.func @transform_2(%arg0: i32, %arg1: i32) -> (i32, i32) {
    %c0_i32 = arith.constant 0 : i32
    %c0_i32_0 = arith.constant 0 : i32
    %c0_i32_1 = arith.constant 0 : i32
    return %c0_i32, %c0_i32_0 : i32, i32
  }
  func.func @transform_3(%arg0: i32, %arg1: i32) -> (i32, i32) {
    %c0_i32 = arith.constant 0 : i32
    %c0_i32_0 = arith.constant 0 : i32
    %c0_i32_1 = arith.constant 0 : i32
    return %c0_i32, %c0_i32_0 : i32, i32
  }
  func.func @transform_4(%arg0: i32, %arg1: i32) -> (i32, i32) {
    %c0_i32 = arith.constant 0 : i32
    %c0_i32_0 = arith.constant 0 : i32
    %c0_i32_1 = arith.constant 0 : i32
    return %c0_i32, %c0_i32_0 : i32, i32
  }
  func.func @transform_5(%arg0: i32, %arg1: i32) -> (i32, i32) {
    %c0_i32 = arith.constant 0 : i32
    %c0_i32_0 = arith.constant 0 : i32
    %c0_i32_1 = arith.constant 0 : i32
    return %c0_i32, %c0_i32_0 : i32, i32
  }
  func.func @transform_6(%arg0: i32, %arg1: i32) -> (i32, i32, i32) {
    %c0_i32 = arith.constant 0 : i32
    %c0_i32_0 = arith.constant 0 : i32
    return %arg0, %c0_i32, %arg1 : i32, i32, i32
  }
}

module attributes {stable_mosaic.version = 11 : i64} {
  func.func @intragate_kernel(%arg0: i32, %arg1: i32, %arg2: memref<1x4x256xf32, #tpu.memory_space<vmem>>, %arg3: memref<1x4x256xf32, #tpu.memory_space<vmem>>, %arg4: memref<4x4xf32, #tpu.memory_space<vmem>>, %arg5: memref<4x1xf32, #tpu.memory_space<vmem>>, %arg6: memref<8x4xf32, #tpu.memory_space<vmem>>, %arg7: memref<8x1xf32, #tpu.memory_space<vmem>>, %arg8: memref<1x4x256xf32, #tpu.memory_space<vmem>>) attributes {dimension_semantics = [#tpu.dimension_semantics<parallel>, #tpu.dimension_semantics<parallel>], iteration_bounds = array<i64: 2, 1>, scalar_prefetch = 0 : i64, scratch_operands = 0 : i64, tpu.core_type = #tpu.core_type<tc>, window_params = [{transform_indices = @transform_0, window_bounds = array<i64: 1, 4, 256>}, {transform_indices = @transform_1, window_bounds = array<i64: 1, 4, 256>}, {pipeline_mode = #tpu.pipeline_mode<synchronous>, transform_indices = @transform_2, window_bounds = array<i64: 4, 4>}, {pipeline_mode = #tpu.pipeline_mode<synchronous>, transform_indices = @transform_3, window_bounds = array<i64: 4, 1>}, {pipeline_mode = #tpu.pipeline_mode<synchronous>, transform_indices = @transform_4, window_bounds = array<i64: 8, 4>}, {pipeline_mode = #tpu.pipeline_mode<synchronous>, transform_indices = @transform_5, window_bounds = array<i64: 8, 1>}, {transform_indices = @transform_6, window_bounds = array<i64: 1, 4, 256>}]} {
    %c0 = arith.constant 0 : index
    %c0_0 = arith.constant 0 : index
    %c0_1 = arith.constant 0 : index
    %0 = vector.load %arg2[%c0, %c0_0, %c0_1] : memref<1x4x256xf32, #tpu.memory_space<vmem>>, vector<1x4x256xf32>
    %1 = vector.shape_cast %0 : vector<1x4x256xf32> to vector<4x256xf32>
    %c0_2 = arith.constant 0 : index
    %c0_3 = arith.constant 0 : index
    %c0_4 = arith.constant 0 : index
    %2 = vector.load %arg3[%c0_2, %c0_3, %c0_4] : memref<1x4x256xf32, #tpu.memory_space<vmem>>, vector<1x4x256xf32>
    %3 = vector.shape_cast %2 : vector<1x4x256xf32> to vector<4x256xf32>
    %c0_5 = arith.constant 0 : index
    %c0_6 = arith.constant 0 : index
    %4 = vector.load %arg5[%c0_5, %c0_6] : memref<4x1xf32, #tpu.memory_space<vmem>>, vector<4x1xf32>
    %c0_7 = arith.constant 0 : index
    %c0_8 = arith.constant 0 : index
    %5 = vector.load %arg4[%c0_7, %c0_8] : memref<4x4xf32, #tpu.memory_space<vmem>>, vector<4x4xf32>
    %6 = vector.shape_cast %4 : vector<4x1xf32> to vector<4x1xf32>
    %7 = vector.broadcast %6 : vector<4x1xf32> to vector<4x256xf32>
    %8 = vector.extract_strided_slice %5 {offsets = [0, 0], sizes = [4, 1], strides = [1, 1]} : vector<4x4xf32> to vector<4x1xf32>
    %9 = vector.extract_strided_slice %1 {offsets = [0, 0], sizes = [1, 256], strides = [1, 1]} : vector<4x256xf32> to vector<1x256xf32>
    %10 = vector.broadcast %8 : vector<4x1xf32> to vector<4x256xf32>
    %11 = vector.broadcast %9 : vector<1x256xf32> to vector<4x256xf32>
    %12 = arith.mulf %10, %11 : vector<4x256xf32>
    %13 = arith.addf %7, %12 : vector<4x256xf32>
    %14 = vector.extract_strided_slice %5 {offsets = [0, 1], sizes = [4, 1], strides = [1, 1]} : vector<4x4xf32> to vector<4x1xf32>
    %15 = vector.extract_strided_slice %1 {offsets = [1, 0], sizes = [1, 256], strides = [1, 1]} : vector<4x256xf32> to vector<1x256xf32>
    %16 = vector.broadcast %14 : vector<4x1xf32> to vector<4x256xf32>
    %17 = vector.broadcast %15 : vector<1x256xf32> to vector<4x256xf32>
    %18 = arith.mulf %16, %17 : vector<4x256xf32>
    %19 = arith.addf %13, %18 : vector<4x256xf32>
    %20 = vector.extract_strided_slice %5 {offsets = [0, 2], sizes = [4, 1], strides = [1, 1]} : vector<4x4xf32> to vector<4x1xf32>
    %21 = vector.extract_strided_slice %1 {offsets = [2, 0], sizes = [1, 256], strides = [1, 1]} : vector<4x256xf32> to vector<1x256xf32>
    %22 = vector.broadcast %20 : vector<4x1xf32> to vector<4x256xf32>
    %23 = vector.broadcast %21 : vector<1x256xf32> to vector<4x256xf32>
    %24 = arith.mulf %22, %23 : vector<4x256xf32>
    %25 = arith.addf %19, %24 : vector<4x256xf32>
    %26 = vector.extract_strided_slice %5 {offsets = [0, 3], sizes = [4, 1], strides = [1, 1]} : vector<4x4xf32> to vector<4x1xf32>
    %27 = vector.extract_strided_slice %1 {offsets = [3, 0], sizes = [1, 256], strides = [1, 1]} : vector<4x256xf32> to vector<1x256xf32>
    %28 = vector.broadcast %26 : vector<4x1xf32> to vector<4x256xf32>
    %29 = vector.broadcast %27 : vector<1x256xf32> to vector<4x256xf32>
    %30 = arith.mulf %28, %29 : vector<4x256xf32>
    %31 = arith.addf %25, %30 : vector<4x256xf32>
    %c0_9 = arith.constant 0 : index
    %c0_10 = arith.constant 0 : index
    %32 = vector.load %arg7[%c0_9, %c0_10] : memref<8x1xf32, #tpu.memory_space<vmem>>, vector<8x1xf32>
    %c0_11 = arith.constant 0 : index
    %c0_12 = arith.constant 0 : index
    %33 = vector.load %arg6[%c0_11, %c0_12] : memref<8x4xf32, #tpu.memory_space<vmem>>, vector<8x4xf32>
    %34 = vector.shape_cast %32 : vector<8x1xf32> to vector<8x1xf32>
    %35 = vector.broadcast %34 : vector<8x1xf32> to vector<8x256xf32>
    %36 = vector.extract_strided_slice %33 {offsets = [0, 0], sizes = [8, 1], strides = [1, 1]} : vector<8x4xf32> to vector<8x1xf32>
    %37 = vector.extract_strided_slice %3 {offsets = [0, 0], sizes = [1, 256], strides = [1, 1]} : vector<4x256xf32> to vector<1x256xf32>
    %38 = vector.broadcast %36 : vector<8x1xf32> to vector<8x256xf32>
    %39 = vector.broadcast %37 : vector<1x256xf32> to vector<8x256xf32>
    %40 = arith.mulf %38, %39 : vector<8x256xf32>
    %41 = arith.addf %35, %40 : vector<8x256xf32>
    %42 = vector.extract_strided_slice %33 {offsets = [0, 1], sizes = [8, 1], strides = [1, 1]} : vector<8x4xf32> to vector<8x1xf32>
    %43 = vector.extract_strided_slice %3 {offsets = [1, 0], sizes = [1, 256], strides = [1, 1]} : vector<4x256xf32> to vector<1x256xf32>
    %44 = vector.broadcast %42 : vector<8x1xf32> to vector<8x256xf32>
    %45 = vector.broadcast %43 : vector<1x256xf32> to vector<8x256xf32>
    %46 = arith.mulf %44, %45 : vector<8x256xf32>
    %47 = arith.addf %41, %46 : vector<8x256xf32>
    %48 = vector.extract_strided_slice %33 {offsets = [0, 2], sizes = [8, 1], strides = [1, 1]} : vector<8x4xf32> to vector<8x1xf32>
    %49 = vector.extract_strided_slice %3 {offsets = [2, 0], sizes = [1, 256], strides = [1, 1]} : vector<4x256xf32> to vector<1x256xf32>
    %50 = vector.broadcast %48 : vector<8x1xf32> to vector<8x256xf32>
    %51 = vector.broadcast %49 : vector<1x256xf32> to vector<8x256xf32>
    %52 = arith.mulf %50, %51 : vector<8x256xf32>
    %53 = arith.addf %47, %52 : vector<8x256xf32>
    %54 = vector.extract_strided_slice %33 {offsets = [0, 3], sizes = [8, 1], strides = [1, 1]} : vector<8x4xf32> to vector<8x1xf32>
    %55 = vector.extract_strided_slice %3 {offsets = [3, 0], sizes = [1, 256], strides = [1, 1]} : vector<4x256xf32> to vector<1x256xf32>
    %56 = vector.broadcast %54 : vector<8x1xf32> to vector<8x256xf32>
    %57 = vector.broadcast %55 : vector<1x256xf32> to vector<8x256xf32>
    %58 = arith.mulf %56, %57 : vector<8x256xf32>
    %59 = arith.addf %53, %58 : vector<8x256xf32>
    %60 = vector.extract_strided_slice %59 {offsets = [0, 0], sizes = [4, 256], strides = [1, 1]} : vector<8x256xf32> to vector<4x256xf32>
    %61 = vector.extract_strided_slice %59 {offsets = [4, 0], sizes = [4, 256], strides = [1, 1]} : vector<8x256xf32> to vector<4x256xf32>
    %62 = arith.mulf %31, %60 : vector<4x256xf32>
    %63 = arith.negf %62 : vector<4x256xf32>
    %64 = math.exp %63 : vector<4x256xf32>
    %cst = arith.constant 1.000000e+00 : f32
    %65 = vector.broadcast %cst : f32 to vector<4x256xf32>
    %66 = arith.addf %65, %64 : vector<4x256xf32>
    %67 = arith.divf %65, %66 : vector<4x256xf32>
    %68 = arith.mulf %31, %67 : vector<4x256xf32>
    %69 = arith.addf %68, %61 : vector<4x256xf32>
    %c0_13 = arith.constant 0 : index
    %c0_14 = arith.constant 0 : index
    %c0_15 = arith.constant 0 : index
    %70 = vector.load %arg8[%c0_13, %c0_14, %c0_15] : memref<1x4x256xf32, #tpu.memory_space<vmem>>, vector<1x4x256xf32>
    %71 = vector.shape_cast %70 : vector<1x4x256xf32> to vector<4x256xf32>
    %72 = vector.shape_cast %69 : vector<4x256xf32> to vector<1x4x256xf32>
    tpu.vector_store %arg8[%c0_13, %c0_14, %c0_15], %72 {strides = array<i32>} : memref<1x4x256xf32, #tpu.memory_space<vmem>>, vector<1x4x256xf32>,
    return
  }
  func.func @transform_0(%arg0: i32, %arg1: i32) -> (i32, i32, i32) {
    %c0_i32 = arith.constant 0 : i32
    %c0_i32_0 = arith.constant 0 : i32
    return %arg0, %c0_i32, %arg1 : i32, i32, i32
  }
  func.func @transform_1(%arg0: i32, %arg1: i32) -> (i32, i32, i32) {
    %c0_i32 = arith.constant 0 : i32
    %c0_i32_0 = arith.constant 0 : i32
    return %arg0, %c0_i32, %arg1 : i32, i32, i32
  }
  func.func @transform_2(%arg0: i32, %arg1: i32) -> (i32, i32) {
    %c0_i32 = arith.constant 0 : i32
    %c0_i32_0 = arith.constant 0 : i32
    %c0_i32_1 = arith.constant 0 : i32
    return %c0_i32, %c0_i32_0 : i32, i32
  }
  func.func @transform_3(%arg0: i32, %arg1: i32) -> (i32, i32) {
    %c0_i32 = arith.constant 0 : i32
    %c0_i32_0 = arith.constant 0 : i32
    %c0_i32_1 = arith.constant 0 : i32
    return %c0_i32, %c0_i32_0 : i32, i32
  }
  func.func @transform_4(%arg0: i32, %arg1: i32) -> (i32, i32) {
    %c0_i32 = arith.constant 0 : i32
    %c0_i32_0 = arith.constant 0 : i32
    %c0_i32_1 = arith.constant 0 : i32
    return %c0_i32, %c0_i32_0 : i32, i32
  }
  func.func @transform_5(%arg0: i32, %arg1: i32) -> (i32, i32) {
    %c0_i32 = arith.constant 0 : i32
    %c0_i32_0 = arith.constant 0 : i32
    %c0_i32_1 = arith.constant 0 : i32
    return %c0_i32, %c0_i32_0 : i32, i32
  }
  func.func @transform_6(%arg0: i32, %arg1: i32) -> (i32, i32, i32) {
    %c0_i32 = arith.constant 0 : i32
    %c0_i32_0 = arith.constant 0 : i32
    return %arg0, %c0_i32, %arg1 : i32, i32, i32
  }
}

</mosaic_0001>

<bundles_post_ra>
// kernel: tpu_custom_call.1
= control target key start
LH: loop header
LB: loop body
LE: loop exit
PB: predicated region body
PF: predicated region fallthrough
CT: control target
= control target key end

     0   :  { %11 = vsyncpa [#allocation3], 0  ;;  %s1154_s0 = inlined_call_operand.vmem [shape: f32[2,4,256], index: 0, kind: input, shape index: {}]   ;;  %s1155_s1 = inlined_call_operand.hbm [shape: f32[2,4,256], index: 1, kind: input, shape index: {}]   ;;  %s1156_s2 = inlined_call_operand.vmem [shape: f32[4,4], index: 2, kind: input, shape index: {}]   ;;  %s1157_s3 = inlined_call_operand.vmem [shape: f32[4,1], index: 3, kind: input, shape index: {}]   ;;  %s1158_s4 = inlined_call_operand.vmem [shape: f32[8,4], index: 4, kind: input, shape index: {}]   ;;  %s1159_s5 = inlined_call_operand.vmem [shape: f32[8,1], index: 5, kind: input, shape index: {}]   ;;  %s1160_s6 = inlined_call_operand.hbm [shape: f32[2,4,256], index: 6, kind: output, shape index: {}]  }
   0x1   :  { %13 = vsyncpa [#allocation3 + $0x1], 0 }
   0x2   :  { %14 = vsyncpa [#allocation4], 0 }
   0x3   :  { %16 = vsyncpa [#allocation4 + $0x1], 0  ;;  %s958_s21 = smov 0   ;;  %s960_s22 = smov 0  }
   0x4   :  { %s962_s23 = smov 0   ;;  %s964_s24 = smov 0  }
   0x5   :  { %s966_s25 = smov 0   ;;  %s968_s26 = smov 0  }
   0x6 LB: > { %s700_s27 = sadd.s32 4294967295, %s915_s26   ;;  %s701_s28 = sadd.s32 4294967294, %s915_s26   ;;  %s915_s26 = sphi %s968_s26, %s22_s26   ;;  %s911_s25 = sphi %s966_s25, %s1176_s25   ;;  %s907_s24 = sphi %s964_s24, %s1175_s24   ;;  %s903_s23 = sphi %s962_s23, %s1174_s23   ;;  %s899_s22 = sphi %s960_s22, %s1173_s22   ;;  %s895_s21 = sphi %s958_s21, %s1172_s21  }
   0x7   : > { %s34_s29 = sadd.s32 1, %s911_s25  ;;  %s71_s30 = sadd.s32 1, %s903_s23 }
   0x8   : > { %p36_p0 = scmp.ge.s32.totalorder %s34_s29, 2  ;;  %p78_p1 = scmp.ne.s32.totalorder %s903_s23, %s899_s22 }
   0x9   : > { %p79_p2 = scmp.eq.s32.totalorder %s915_s26, 0  ;;  %p84_p3 = scmp.ne.s32.totalorder %s899_s22, %s895_s21 }
   0xa   : > { %s1178_s29 = smov (%p36_p0, %s34_s29), 0  ;;  %p85_p5 = scmp.eq.s32.totalorder %s700_s27, 0 }
   0xb   : > { %p999_p4 = por %p79_p2, %p78_p1  ;;  %s66_s8 = ssub.s32 %s911_s25, %s1178_s29 }
   0xc   : > { %p194_p6 = scmp.eq.s32.totalorder %s700_s27, 1  ;;  %p69_p7 = scmp.eq.s32.totalorder %s66_s8, 0 }
   0xd   : > { %p1005_p8 = por %p85_p5, %p84_p3  ;;  %p200_p10 = scmp.eq.s32.totalorder %s701_s28, 1 }
   0xe   : > { %p1009_p9 = por %p194_p6, %p78_p1  ;;  %p734_p13 = scmp.lt.s32.totalorder %s915_s26, 2 }
   0xf   : > { %s1014_s11 = scalar_select %p69_p7, %s903_s23, %s71_s30  }
  0x10   : > { %s1164_s10 = scalar_select %p1009_p9, 1, 0 }
  0x11   : > { %p1016_p11 = por %p200_p10, %p84_p3  ;;  %s245_s13 = sand.u32 1, %s903_s23  }
  0x12   : > { %s704_s14 = sshll.u32 %s245_s13, 3  ;;  %s719_s15 = sshll.u32 %s911_s25, 7 }
  0x13   : > { %s1165_s12 = scalar_select %p1016_p11, 1, 0 }
  0x14   : > { %s1027_s18 = scalar_lea.hbm %s1155_s1, %s719_s15  ;;  %s249_s19 = scalar_lea.vmem [#allocation2], %s704_s14 }
  0x15   : > { %s259_s20 = sshll.u32 %s249_s19, 4  ;;  %p1033_p0 = pnand %p734_p13, %p999_p4  ;;  %s1029_s20 = int_to_ptr.vmem [resolvable:$true] %s259_s20 }
  0x16   : > { %s246_s28 = scalar_lea.sflag [#allocation3], %s245_s13  ;;  %s803_s30 = scalar_lea.hbm %s1027_s18, 128 }
  0x17   : > { %p804_p3 = scmp.ne.s32.totalorder %s1027_s18, %s803_s30  ;;  %p805_p5 = pneg %p1033_p0 }
  0x18   : > { %s808_s7 = scalar_lea.hbm %s1155_s1, 256  ;;  %p809_p4 = scmp.lt.u32.totalorder %s1027_s18, %s1155_s1 }
  0x19   : > { %p806_p6 = pnand %p805_p5, %p804_p3  ;;  %p810_p10 = scmp.lt.u32.totalorder %s808_s7, %s803_s30 }
  0x1a   : > { %p812_p12 = scmp.lt.u32.totalorder %s803_s30, %s1027_s18 }
  0x1b   : > { %p807_p7 = pneg %p806_p6  ;;  %p811_p13 = por %p810_p10, %p809_p4 }
  0x1d   : > { %p813_p1 = por %p812_p12, %p811_p13 }
  0x1f   : > { %p814_p2 = pnand %p813_p1, %p807_p7 }
  0x21   : > { %817 = shalt.err (!%p814_p2)
}
  0x22   : > { %s818_s13 = scalar_lea.vmem %s1029_s20, 128  ;;  %s917_s17 = smov [#allocation2]  }
  0x23   : > { %p819_p3 = scmp.ne.s32.totalorder %s1029_s20, %s818_s13  ;;  %s823_s19 = sshll.u32 %s917_s17, 4  ;;  %s824_s19 = int_to_ptr.vmem [resolvable:$false] %s823_s19 }
  0x24   : > { %s825_s8 = scalar_lea.vmem %s824_s19, 256  ;;  %p826_p9 = scmp.lt.s32.totalorder %s1029_s20, %s824_s19 }
  0x25   : > { %p821_p6 = pnand %p819_p3, %p805_p5  ;;  %p827_p4 = scmp.lt.s32.totalorder %s825_s8, %s818_s13 }
  0x27   : > { %p822_p11 = pneg %p821_p6  ;;  %p828_p10 = por %p827_p4, %p826_p9 }
  0x29   : > { %p829_p12 = pnand %p828_p10, %p822_p11 }
  0x2b   : > { %832 = shalt.err (!%p829_p12)
}
  0x2c   : > { %729 = dma.hbm_to_vmem [thread:$0]  (!%p1033_p0), %s1027_s18, 128, %s1029_s20, %s246_s28  }
  0x2d   : > { %p1167_p1 = scmp.lt.s32.totalorder %s915_s26, 3  ;;  %p1168_p2 = scmp.ge.s32.totalorder %s915_s26, 1 }
  0x2f   : > { %p265_p5 = pnand %p1168_p2, %p1167_p1 }
  0x30   : > { %s1069_s30 = sand.u32 (!%p265_p5), 1, %s899_s22  }
  0x31   : > { %268 = sbr.rel (%p265_p5) target bundleno = 259 (0x103), region = 44  ;;  %s708_s14 = sshll.u32 (!%p265_p5), %s1069_s30, 3 }
  0x32   : > { %s271_s7 = scalar_lea.sflag (!%p265_p5), [#allocation3], %s1069_s30  ;;  %s1075_s27 = scalar_lea.vmem (!%p265_p5), [#allocation2], %s708_s14 }
  0x38   : > { %886 = dma.done.wait (%p1005_p8), %s271_s7, 128  }
  0x39   : > { %888 = vsyncadd (%p1005_p8), %s271_s7, 4294967168  ;;  %v918_v0 = vmov 0   ;;  %v327_v1 = vld [vmem:[%s1156_s2] sm:$0xf]  ;;  %v919_v4 = vmov 1   ;;  %v920_v6 = vmov 2   ;;  %v339_v8 = vlaneseq }
  0x3a   : > { %789 = vset.pattern.permute.xlu1 %v918_v0  ;;  %788 = vset.pattern.permute.xlu0 %v918_v0  ;;  %v326_v2 = vld [vmem:[%s1157_s3] sm:$0xf]  ;;  %v921_v7 = vmov 3   ;;  %p313_p8 = scmp.lt.s32.totalorder %s907_s24, 1  ;;  %s311_s28 = scalar_lea.vmem [#allocation5], %s708_s14 }
  0x3b   : > { %335 = vperm.xlu0 %788, %v327_v1   ;;  %330 = vperm.xlu1 %789, %v326_v2   ;;  %v440_v3 = vld [vmem:[%s1158_s4] sm:$0xff]  ;;  %v340_v9 = vshrl.u32 %v339_v8, 7  ;;  %s598_s15 = sshll.u32 %s311_s28, 4  ;;  %s582_s17 = scalar_lea.sflag [#allocation4], %s1069_s30  ;;  %s1107_s15 = int_to_ptr.vmem [resolvable:$true] %s598_s15 }
  0x3c   : > { %v439_v5 = vld [vmem:[%s1159_s5] sm:$0xff]  ;;  %s314_s19 = scalar_select %p313_p8, %s907_s24, 1 }
  0x3d   : > { %v341_v10 = vsub.s32 0, %v340_v9  ;;  %v345_v11 = vsub.s32 4, %v340_v9  ;;  %v325_v14 = vld [vmem:[%s1075_s27] sm:$0xff]  ;;  %v367_v16 = vsub.s32 1, %v340_v9  ;;  %v371_v17 = vsub.s32 5, %v340_v9  ;;  %s721_s27 = sshll.u32 %s907_s24, 7 }
  0x3e   : > { %s720_s8 = sshll.u32 %s314_s19, 3  ;;  %v393_v18 = vsub.s32 2, %v340_v9  ;;  %v397_v19 = vsub.s32 6, %v340_v9  ;;  %v419_v32 = vsub.s32 3, %v340_v9  ;;  %v423_v33 = vsub.s32 7, %v340_v9  ;;  %s1105_s9 = scalar_lea.hbm %s1160_s6, %s721_s27 }
  0x3f   : > { %448 = vperm.xlu0 %788, %v440_v3   ;;  %790 = vset.pattern.permute.xlu1 %v919_v4  ;;  %s320_s20 = scalar_lea.vmem %s1154_s0, %s720_s8  ;;  %v455_v20 = vrot.slane %v325_v14, %v341_v10  ;;  %v459_v21 = vrot.slane %v325_v14, %v345_v11  ;;  %v481_v28 = vrot.slane %v325_v14, %v367_v16  ;;  %s833_s19 = scalar_lea.vmem %s1107_s15, 128 }
  0x40   : > { %362 = vperm.xlu1 %790, %v327_v1   ;;  %v324_v15 = vld [vmem:[%s320_s20] sm:$0xff]  ;;  %v485_v29 = vrot.slane %v325_v14, %v371_v17  ;;  %v507_v30 = vrot.slane %v325_v14, %v393_v18  ;;  %v511_v31 = vrot.slane %v325_v14, %v397_v19  ;;  %v533_v48 = vrot.slane %v325_v14, %v419_v32  ;;  %p834_p9 = scmp.ne.s32.totalorder %s1107_s15, %s833_s19  ;;  %p1169_p11 = scmp.ne.s32.totalorder %s1164_s10, 0 }
  0x41   : > { %v342_v22 = vrot.slane %v324_v15, %v341_v10  ;;  %v346_v23 = vrot.slane %v324_v15, %v345_v11  ;;  %v368_v26 = vrot.slane %v324_v15, %v367_v16  ;;  %v372_v27 = vrot.slane %v324_v15, %v371_v17  ;;  %s922_s24 = smov [#allocation5]  }
  0x42   : > { %v465_v34 = vrot.slane %v455_v20, %v341_v10  ;;  %v469_v35 = vrot.slane %v459_v21, %v341_v10  ;;  %v394_v39 = vrot.slane %v324_v15, %v393_v18  ;;  %v398_v40 = vrot.slane %v324_v15, %v397_v19  ;;  %p835_p0 = pnand %p834_p9, %p1169_p11  ;;  %s837_s14 = sshll.u32 %s922_s24, 4  ;;  %s838_s14 = int_to_ptr.vmem [resolvable:$false] %s837_s14 }
  0x43   : > { %443 = vperm.xlu0 %788, %v439_v5   ;;  %v352_v36 = vrot.slane %v342_v22, %v341_v10  ;;  %v356_v37 = vrot.slane %v346_v23, %v341_v10  ;;  %v378_v41 = vrot.slane %v368_v26, %v367_v16  ;;  %v382_v42 = vrot.slane %v372_v27, %v367_v16  ;;  %s839_s8 = scalar_lea.vmem %s838_s14, 256  ;;  %p840_p13 = scmp.lt.s32.totalorder %s1107_s15, %s838_s14 }
  0x44   : > { %475 = vperm.xlu1 %790, %v440_v3   ;;  %v491_v44 = vrot.slane %v481_v28, %v367_v16  ;;  %v495_v45 = vrot.slane %v485_v29, %v367_v16  ;;  %v517_v46 = vrot.slane %v507_v30, %v393_v18  ;;  %v521_v47 = vrot.slane %v511_v31, %v393_v18  ;;  %p836_p7 = pneg %p835_p0  ;;  %p841_p3 = scmp.lt.s32.totalorder %s839_s8, %s833_s19 }
  0x45   : > { %v537_v49 = vrot.slane %v325_v14, %v423_v33  ;;  %v420_v52 = vrot.slane %v324_v15, %v419_v32  ;;  %v424_v53 = vrot.slane %v324_v15, %v423_v33  ;;  %v404_v56 = vrot.slane %v394_v39, %v393_v18 }
  0x46   : > { %v408_v57 = vrot.slane %v398_v40, %v393_v18  ;;  %v543_v2 = vrot.slane %v533_v48, %v419_v32  ;;  %p842_p6 = por %p841_p3, %p840_p13 }
  0x47   : > { %791 = vset.pattern.permute.xlu0 %v920_v6 }
  0x48   : > { %388 = vperm.xlu0 %791, %v327_v1   ;;  %792 = vset.pattern.permute.xlu1 %v920_v6  ;;  %v430_v6 = vrot.slane %v420_v52, %v419_v32  ;;  %p843_p4 = pnand %p842_p6, %p836_p7 }
  0x49   : > { %501 = vperm.xlu1 %792, %v440_v3  }
  0x4c   : > { %794 = vset.pattern.permute.xlu0 %v921_v7 }
  0x4d   : > { %527 = vperm.xlu0 %794, %v440_v3   ;;  %793 = vset.pattern.permute.xlu1 %v921_v7  ;;  %v547_v3 = vrot.slane %v537_v49, %v419_v32  ;;  %v434_v7 = vrot.slane %v424_v53, %v419_v32 }
  0x4e   : > { %414 = vperm.xlu1 %793, %v327_v1  }
  0xba   : > { %v336_v12 = vpop.permute.xlu0 %335  ;;  %v331_v13 = vpop.permute.xlu1 %330 }
  0xbb   : > { %v357_v54 = vmul.f32 %v352_v36, %v336_v12  ;;  %v358_v55 = vmul.f32 %v356_v37, %v336_v12 }
  0xbd   : > { %v359_v8 = vadd.f32 %v357_v54, %v331_v13  ;;  %v360_v9 = vadd.f32 %v358_v55, %v331_v13 }
  0xbe   : > { %v449_v24 = vpop.permute.xlu0 %448 }
  0xbf   : > { %v363_v25 = vpop.permute.xlu1 %362  ;;  %v470_v50 = vmul.f32 %v465_v34, %v449_v24  ;;  %v471_v51 = vmul.f32 %v469_v35, %v449_v24 }
  0xc0   : > { %v383_v63 = vmul.f32 %v378_v41, %v363_v25  ;;  %v384_v0 = vmul.f32 %v382_v42, %v363_v25 }
  0xc2   : > { %v444_v38 = vpop.permute.xlu0 %443  ;;  %v385_v15 = vadd.f32 %v383_v63, %v359_v8  ;;  %v386_v16 = vadd.f32 %v384_v0, %v360_v9 }
  0xc3   : > { %v476_v43 = vpop.permute.xlu1 %475  ;;  %v472_v58 = vadd.f32 %v470_v50, %v444_v38  ;;  %v473_v59 = vadd.f32 %v471_v51, %v444_v38 }
  0xc4   : > { %v496_v60 = vmul.f32 %v491_v44, %v476_v43  ;;  %v497_v61 = vmul.f32 %v495_v45, %v476_v43 }
  0xc6   : > { %v498_v12 = vadd.f32 %v496_v60, %v472_v58  ;;  %v499_v14 = vadd.f32 %v497_v61, %v473_v59 }
  0xc7   : > { %v389_v62 = vpop.permute.xlu0 %388 }
  0xc8   : > { %v502_v1 = vpop.permute.xlu1 %501  ;;  %v409_v10 = vmul.f32 %v404_v56, %v389_v62  ;;  %v410_v11 = vmul.f32 %v408_v57, %v389_v62 }
  0xc9   : > { %v522_v4 = vmul.f32 %v517_v46, %v502_v1  ;;  %v523_v5 = vmul.f32 %v521_v47, %v502_v1 }
  0xca   : > { %v411_v23 = vadd.f32 %v409_v10, %v385_v15  ;;  %v412_v24 = vadd.f32 %v410_v11, %v386_v16 }
  0xcb   : > { %v524_v18 = vadd.f32 %v522_v4, %v498_v12  ;;  %v525_v19 = vadd.f32 %v523_v5, %v499_v14 }
  0xcc   : > { %v528_v17 = vpop.permute.xlu0 %527 }
  0xcd   : > { %v548_v20 = vmul.f32 %v543_v2, %v528_v17  ;;  %v549_v21 = vmul.f32 %v547_v3, %v528_v17  ;;  %v415_v22 = vpop.permute.xlu1 %414 }
  0xce   : > { %v435_v25 = vmul.f32 %v430_v6, %v415_v22  ;;  %v436_v26 = vmul.f32 %v434_v7, %v415_v22 }
  0xcf   : > { %v550_v27 = vadd.f32 %v548_v20, %v524_v18  ;;  %v551_v28 = vadd.f32 %v549_v21, %v525_v19 }
  0xd0   : > { %v437_v29 = vadd.f32 %v435_v25, %v411_v23  ;;  %v438_v13 = vadd.f32 %v436_v26, %v412_v24 }
  0xd1   : > { %v570_v40 = vrot.slane %v550_v27, 4  ;;  %v571_v42 = vrot.slane %v551_v28, 4 }
  0xd2   : > { %v552_v30 = vmul.f32 %v550_v27, %v437_v29  ;;  %v553_v31 = vmul.f32 %v551_v28, %v438_v13 }
  0xd4   : > { %v712_v32 = vmul.f32 -1.442695, %v552_v30  ;;  %v713_v33 = vmul.f32 -1.442695, %v553_v31 }
  0xd6   : > { %795 = vpow2.f32 %v712_v32 }
  0xd7   : > { %797 = vpow2.f32 %v713_v33 }
  0xe0   : > { %v796_v34 = vpop.eup %795 }
  0xe1   : > { %v798_v35 = vpop.eup %797  ;;  %v560_v36 = vadd.f32 1.0, %v796_v34 }
  0xe2   : > { %v561_v37 = vadd.f32 1.0, %v798_v35 }
  0xe3   : > { %799 = vrcp.f32 %v560_v36 }
  0xe4   : > { %801 = vrcp.f32 %v561_v37 }
  0xed   : > { %v800_v38 = vpop.eup %799 }
  0xee   : > { %v802_v39 = vpop.eup %801  ;;  %v566_v41 = vmul.f32 %v800_v38, %v437_v29 }
  0xef   : > { %v567_v43 = vmul.f32 %v802_v39, %v438_v13 }
  0xf0   : > { %v574_v44 = vadd.f32 %v570_v40, %v566_v41 }
  0xf1   : > { %v575_v45 = vadd.f32 %v571_v42, %v567_v43 }
  0xf3   : > { %v578_v46 = vcombine.low %v574_v44, %v575_v45 }
  0xf5   : > { %580 = vst [vmem:[%s311_s28] sm:$0xff] %v578_v46 }
  0xf6   : > { %846 = shalt.err (!%p843_p4)
}
  0xf7   : > { %s847_s30 = scalar_lea.hbm %s1105_s9, 128  ;;  %s851_s20 = scalar_lea.hbm %s1160_s6, 256 }
  0xf8   : > { %p848_p10 = scmp.ne.s32.totalorder %s1105_s9, %s847_s30  ;;  %p852_p2 = scmp.lt.u32.totalorder %s1105_s9, %s1160_s6 }
  0xf9   : > { %p853_p5 = scmp.lt.u32.totalorder %s851_s20, %s847_s30  ;;  %p855_p9 = scmp.lt.u32.totalorder %s847_s30, %s1105_s9 }
  0xfa   : > { %p849_p12 = pnand %p848_p10, %p1169_p11 }
  0xfb   : > { %p854_p8 = por %p853_p5, %p852_p2 }
  0xfc   : > { %p850_p1 = pneg %p849_p12 }
  0xfd   : > { %p856_p0 = por %p855_p9, %p854_p8 }
  0xff   : > { %p857_p7 = pnand %p856_p0, %p850_p1 }
 0x101   : > { %860 = shalt.err (!%p857_p7)
}
 0x102   : > { %724 = dma.vmem_to_hbm [thread:$0]  (%p1169_p11), %s1107_s15, 128, %s1105_s9, %s582_s17  }
 0x103 PF: > { %s610_s16 = sand.u32 1, %s895_s21   ;;  %p1170_p13 = scmp.ne.s32.totalorder %s1165_s12, 0 }
 0x104   : > { %p1171_p3 = scmp.ge.s32.totalorder %s915_s26, 2  ;;  %s611_s13 = scalar_lea.sflag [#allocation4], %s610_s16 }
 0x106   : > { %p731_p6 = pnand %p1171_p3, %p1170_p13 }
 0x108   : > { %890 = dma.done.wait (!%p731_p6), %s611_s13, 128  }
 0x109   : > { %892 = vsyncadd (!%p731_p6), %s611_s13, 4294967168  ;;  %s22_s26 = sadd.s32 1, %s915_s26   ;;  %s1172_s21 = smov %s899_s22 }
 0x10a   : > { %p19_p4 = scmp.ge.s32.totalorder %s22_s26, 4   ;;  %s1173_s22 = smov %s903_s23 }
 0x10b   : > { %s1174_s23 = smov %s1014_s11  ;;  %s1175_s24 = smov %s911_s25 }
 0x10c   : > { %s1176_s25 = smov %s1178_s29  ;;  %21 = sbr.rel (!%p19_p4) target bundleno = 6 (0x6), region = 92 }
 0x113   :  { %616 = vsyncpa [#allocation3], 1 }
 0x114   :  { %618 = vsyncpa [#allocation3 + $0x1], 1 }
 0x115   :  { %619 = vsyncpa [#allocation4], 1 }
 0x116   :  { %621 = vsyncpa [#allocation4 + $0x1], 1 }

// kernel: tpu_custom_call.1
= control target key start
LH: loop header
LB: loop body
LE: loop exit
PB: predicated region body
PF: predicated region fallthrough
CT: control target
= control target key end

     0   :  { %11 = vsyncpa [#allocation3], 0  ;;  %s1154_s0 = inlined_call_operand.vmem [shape: f32[2,4,256], index: 0, kind: input, shape index: {}]   ;;  %s1155_s1 = inlined_call_operand.hbm [shape: f32[2,4,256], index: 1, kind: input, shape index: {}]   ;;  %s1156_s2 = inlined_call_operand.vmem [shape: f32[4,4], index: 2, kind: input, shape index: {}]   ;;  %s1157_s3 = inlined_call_operand.vmem [shape: f32[4,1], index: 3, kind: input, shape index: {}]   ;;  %s1158_s4 = inlined_call_operand.vmem [shape: f32[8,4], index: 4, kind: input, shape index: {}]   ;;  %s1159_s5 = inlined_call_operand.vmem [shape: f32[8,1], index: 5, kind: input, shape index: {}]   ;;  %s1160_s6 = inlined_call_operand.hbm [shape: f32[2,4,256], index: 6, kind: output, shape index: {}]  }
   0x1   :  { %13 = vsyncpa [#allocation3 + $0x1], 0 }
   0x2   :  { %14 = vsyncpa [#allocation4], 0 }
   0x3   :  { %16 = vsyncpa [#allocation4 + $0x1], 0  ;;  %s958_s21 = smov 0   ;;  %s960_s22 = smov 0  }
   0x4   :  { %s962_s23 = smov 0   ;;  %s964_s24 = smov 0  }
   0x5   :  { %s966_s25 = smov 0   ;;  %s968_s26 = smov 0  }
   0x6 LB: > { %s700_s27 = sadd.s32 4294967295, %s915_s26   ;;  %s701_s28 = sadd.s32 4294967294, %s915_s26   ;;  %s915_s26 = sphi %s968_s26, %s22_s26   ;;  %s911_s25 = sphi %s966_s25, %s1176_s25   ;;  %s907_s24 = sphi %s964_s24, %s1175_s24   ;;  %s903_s23 = sphi %s962_s23, %s1174_s23   ;;  %s899_s22 = sphi %s960_s22, %s1173_s22   ;;  %s895_s21 = sphi %s958_s21, %s1172_s21  }
   0x7   : > { %s34_s29 = sadd.s32 1, %s911_s25  ;;  %s71_s30 = sadd.s32 1, %s903_s23 }
   0x8   : > { %p36_p0 = scmp.ge.s32.totalorder %s34_s29, 2  ;;  %p78_p1 = scmp.ne.s32.totalorder %s903_s23, %s899_s22 }
   0x9   : > { %p79_p2 = scmp.eq.s32.totalorder %s915_s26, 0  ;;  %p84_p3 = scmp.ne.s32.totalorder %s899_s22, %s895_s21 }
   0xa   : > { %s1178_s29 = smov (%p36_p0, %s34_s29), 0  ;;  %p85_p5 = scmp.eq.s32.totalorder %s700_s27, 0 }
   0xb   : > { %p999_p4 = por %p79_p2, %p78_p1  ;;  %s66_s8 = ssub.s32 %s911_s25, %s1178_s29 }
   0xc   : > { %p194_p6 = scmp.eq.s32.totalorder %s700_s27, 1  ;;  %p69_p7 = scmp.eq.s32.totalorder %s66_s8, 0 }
   0xd   : > { %p1005_p8 = por %p85_p5, %p84_p3  ;;  %p200_p10 = scmp.eq.s32.totalorder %s701_s28, 1 }
   0xe   : > { %p1009_p9 = por %p194_p6, %p78_p1  ;;  %p734_p13 = scmp.lt.s32.totalorder %s915_s26, 2 }
   0xf   : > { %s1014_s11 = scalar_select %p69_p7, %s903_s23, %s71_s30  }
  0x10   : > { %s1164_s10 = scalar_select %p1009_p9, 1, 0 }
  0x11   : > { %p1016_p11 = por %p200_p10, %p84_p3  ;;  %s245_s13 = sand.u32 1, %s903_s23  }
  0x12   : > { %s704_s14 = sshll.u32 %s245_s13, 3  ;;  %s719_s15 = sshll.u32 %s911_s25, 7 }
  0x13   : > { %s1165_s12 = scalar_select %p1016_p11, 1, 0 }
  0x14   : > { %s1027_s18 = scalar_lea.hbm %s1155_s1, %s719_s15  ;;  %s249_s19 = scalar_lea.vmem [#allocation2], %s704_s14 }
  0x15   : > { %s259_s20 = sshll.u32 %s249_s19, 4  ;;  %p1033_p0 = pnand %p734_p13, %p999_p4  ;;  %s1029_s20 = int_to_ptr.vmem [resolvable:$true] %s259_s20 }
  0x16   : > { %s246_s28 = scalar_lea.sflag [#allocation3], %s245_s13  ;;  %s803_s30 = scalar_lea.hbm %s1027_s18, 128 }
  0x17   : > { %p804_p3 = scmp.ne.s32.totalorder %s1027_s18, %s803_s30  ;;  %p805_p5 = pneg %p1033_p0 }
  0x18   : > { %s808_s7 = scalar_lea.hbm %s1155_s1, 256  ;;  %p809_p4 = scmp.lt.u32.totalorder %s1027_s18, %s1155_s1 }
  0x19   : > { %p806_p6 = pnand %p805_p5, %p804_p3  ;;  %p810_p10 = scmp.lt.u32.totalorder %s808_s7, %s803_s30 }
  0x1a   : > { %p812_p12 = scmp.lt.u32.totalorder %s803_s30, %s1027_s18 }
  0x1b   : > { %p807_p7 = pneg %p806_p6  ;;  %p811_p13 = por %p810_p10, %p809_p4 }
  0x1d   : > { %p813_p1 = por %p812_p12, %p811_p13 }
  0x1f   : > { %p814_p2 = pnand %p813_p1, %p807_p7 }
  0x21   : > { %817 = shalt.err (!%p814_p2)
}
  0x22   : > { %s818_s13 = scalar_lea.vmem %s1029_s20, 128  ;;  %s917_s17 = smov [#allocation2]  }
  0x23   : > { %p819_p3 = scmp.ne.s32.totalorder %s1029_s20, %s818_s13  ;;  %s823_s19 = sshll.u32 %s917_s17, 4  ;;  %s824_s19 = int_to_ptr.vmem [resolvable:$false] %s823_s19 }
  0x24   : > { %s825_s8 = scalar_lea.vmem %s824_s19, 256  ;;  %p826_p9 = scmp.lt.s32.totalorder %s1029_s20, %s824_s19 }
  0x25   : > { %p821_p6 = pnand %p819_p3, %p805_p5  ;;  %p827_p4 = scmp.lt.s32.totalorder %s825_s8, %s818_s13 }
  0x27   : > { %p822_p11 = pneg %p821_p6  ;;  %p828_p10 = por %p827_p4, %p826_p9 }
  0x29   : > { %p829_p12 = pnand %p828_p10, %p822_p11 }
  0x2b   : > { %832 = shalt.err (!%p829_p12)
}
  0x2c   : > { %729 = dma.hbm_to_vmem [thread:$0]  (!%p1033_p0), %s1027_s18, 128, %s1029_s20, %s246_s28  }
  0x2d   : > { %p1167_p1 = scmp.lt.s32.totalorder %s915_s26, 3  ;;  %p1168_p2 = scmp.ge.s32.totalorder %s915_s26, 1 }
  0x2f   : > { %p265_p5 = pnand %p1168_p2, %p1167_p1 }
  0x30   : > { %s1069_s30 = sand.u32 (!%p265_p5), 1, %s899_s22  }
  0x31   : > { %268 = sbr.rel (%p265_p5) target bundleno = 259 (0x103), region = 44  ;;  %s708_s14 = sshll.u32 (!%p265_p5), %s1069_s30, 3 }
  0x32   : > { %s271_s7 = scalar_lea.sflag (!%p265_p5), [#allocation3], %s1069_s30  ;;  %s1075_s27 = scalar_lea.vmem (!%p265_p5), [#allocation2], %s708_s14 }
  0x38   : > { %886 = dma.done.wait (%p1005_p8), %s271_s7, 128  }
  0x39   : > { %888 = vsyncadd (%p1005_p8), %s271_s7, 4294967168  ;;  %v918_v0 = vmov 0   ;;  %v327_v1 = vld [vmem:[%s1156_s2] sm:$0xf]  ;;  %v919_v4 = vmov 1   ;;  %v920_v6 = vmov 2   ;;  %v339_v8 = vlaneseq }
  0x3a   : > { %789 = vset.pattern.permute.xlu1 %v918_v0  ;;  %788 = vset.pattern.permute.xlu0 %v918_v0  ;;  %v326_v2 = vld [vmem:[%s1157_s3] sm:$0xf]  ;;  %v921_v7 = vmov 3   ;;  %p313_p8 = scmp.lt.s32.totalorder %s907_s24, 1  ;;  %s311_s28 = scalar_lea.vmem [#allocation5], %s708_s14 }
  0x3b   : > { %335 = vperm.xlu0 %788, %v327_v1   ;;  %330 = vperm.xlu1 %789, %v326_v2   ;;  %v440_v3 = vld [vmem:[%s1158_s4] sm:$0xff]  ;;  %v340_v9 = vshrl.u32 %v339_v8, 7  ;;  %s598_s15 = sshll.u32 %s311_s28, 4  ;;  %s582_s17 = scalar_lea.sflag [#allocation4], %s1069_s30  ;;  %s1107_s15 = int_to_ptr.vmem [resolvable:$true] %s598_s15 }
  0x3c   : > { %v439_v5 = vld [vmem:[%s1159_s5] sm:$0xff]  ;;  %s314_s19 = scalar_select %p313_p8, %s907_s24, 1 }
  0x3d   : > { %v341_v10 = vsub.s32 0, %v340_v9  ;;  %v345_v11 = vsub.s32 4, %v340_v9  ;;  %v325_v14 = vld [vmem:[%s1075_s27] sm:$0xff]  ;;  %v367_v16 = vsub.s32 1, %v340_v9  ;;  %v371_v17 = vsub.s32 5, %v340_v9  ;;  %s721_s27 = sshll.u32 %s907_s24, 7 }
  0x3e   : > { %s720_s8 = sshll.u32 %s314_s19, 3  ;;  %v393_v18 = vsub.s32 2, %v340_v9  ;;  %v397_v19 = vsub.s32 6, %v340_v9  ;;  %v419_v32 = vsub.s32 3, %v340_v9  ;;  %v423_v33 = vsub.s32 7, %v340_v9  ;;  %s1105_s9 = scalar_lea.hbm %s1160_s6, %s721_s27 }
  0x3f   : > { %448 = vperm.xlu0 %788, %v440_v3   ;;  %790 = vset.pattern.permute.xlu1 %v919_v4  ;;  %s320_s20 = scalar_lea.vmem %s1154_s0, %s720_s8  ;;  %v455_v20 = vrot.slane %v325_v14, %v341_v10  ;;  %v459_v21 = vrot.slane %v325_v14, %v345_v11  ;;  %v481_v28 = vrot.slane %v325_v14, %v367_v16  ;;  %s833_s19 = scalar_lea.vmem %s1107_s15, 128 }
  0x40   : > { %362 = vperm.xlu1 %790, %v327_v1   ;;  %v324_v15 = vld [vmem:[%s320_s20] sm:$0xff]  ;;  %v485_v29 = vrot.slane %v325_v14, %v371_v17  ;;  %v507_v30 = vrot.slane %v325_v14, %v393_v18  ;;  %v511_v31 = vrot.slane %v325_v14, %v397_v19  ;;  %v533_v48 = vrot.slane %v325_v14, %v419_v32  ;;  %p834_p9 = scmp.ne.s32.totalorder %s1107_s15, %s833_s19  ;;  %p1169_p11 = scmp.ne.s32.totalorder %s1164_s10, 0 }
  0x41   : > { %v342_v22 = vrot.slane %v324_v15, %v341_v10  ;;  %v346_v23 = vrot.slane %v324_v15, %v345_v11  ;;  %v368_v26 = vrot.slane %v324_v15, %v367_v16  ;;  %v372_v27 = vrot.slane %v324_v15, %v371_v17  ;;  %s922_s24 = smov [#allocation5]  }
  0x42   : > { %v465_v34 = vrot.slane %v455_v20, %v341_v10  ;;  %v469_v35 = vrot.slane %v459_v21, %v341_v10  ;;  %v394_v39 = vrot.slane %v324_v15, %v393_v18  ;;  %v398_v40 = vrot.slane %v324_v15, %v397_v19  ;;  %p835_p0 = pnand %p834_p9, %p1169_p11  ;;  %s837_s14 = sshll.u32 %s922_s24, 4  ;;  %s838_s14 = int_to_ptr.vmem [resolvable:$false] %s837_s14 }
  0x43   : > { %443 = vperm.xlu0 %788, %v439_v5   ;;  %v352_v36 = vrot.slane %v342_v22, %v341_v10  ;;  %v356_v37 = vrot.slane %v346_v23, %v341_v10  ;;  %v378_v41 = vrot.slane %v368_v26, %v367_v16  ;;  %v382_v42 = vrot.slane %v372_v27, %v367_v16  ;;  %s839_s8 = scalar_lea.vmem %s838_s14, 256  ;;  %p840_p13 = scmp.lt.s32.totalorder %s1107_s15, %s838_s14 }
  0x44   : > { %475 = vperm.xlu1 %790, %v440_v3   ;;  %v491_v44 = vrot.slane %v481_v28, %v367_v16  ;;  %v495_v45 = vrot.slane %v485_v29, %v367_v16  ;;  %v517_v46 = vrot.slane %v507_v30, %v393_v18  ;;  %v521_v47 = vrot.slane %v511_v31, %v393_v18  ;;  %p836_p7 = pneg %p835_p0  ;;  %p841_p3 = scmp.lt.s32.totalorder %s839_s8, %s833_s19 }
  0x45   : > { %v537_v49 = vrot.slane %v325_v14, %v423_v33  ;;  %v420_v52 = vrot.slane %v324_v15, %v419_v32  ;;  %v424_v53 = vrot.slane %v324_v15, %v423_v33  ;;  %v404_v56 = vrot.slane %v394_v39, %v393_v18 }
  0x46   : > { %v408_v57 = vrot.slane %v398_v40, %v393_v18  ;;  %v543_v2 = vrot.slane %v533_v48, %v419_v32  ;;  %p842_p6 = por %p841_p3, %p840_p13 }
  0x47   : > { %791 = vset.pattern.permute.xlu0 %v920_v6 }
  0x48   : > { %388 = vperm.xlu0 %791, %v327_v1   ;;  %792 = vset.pattern.permute.xlu1 %v920_v6  ;;  %v430_v6 = vrot.slane %v420_v52, %v419_v32  ;;  %p843_p4 = pnand %p842_p6, %p836_p7 }
  0x49   : > { %501 = vperm.xlu1 %792, %v440_v3  }
  0x4c   : > { %794 = vset.pattern.permute.xlu0 %v921_v7 }
  0x4d   : > { %527 = vperm.xlu0 %794, %v440_v3   ;;  %793 = vset.pattern.permute.xlu1 %v921_v7  ;;  %v547_v3 = vrot.slane %v537_v49, %v419_v32  ;;  %v434_v7 = vrot.slane %v424_v53, %v419_v32 }
  0x4e   : > { %414 = vperm.xlu1 %793, %v327_v1  }
  0xba   : > { %v336_v12 = vpop.permute.xlu0 %335  ;;  %v331_v13 = vpop.permute.xlu1 %330 }
  0xbb   : > { %v357_v54 = vmul.f32 %v352_v36, %v336_v12  ;;  %v358_v55 = vmul.f32 %v356_v37, %v336_v12 }
  0xbd   : > { %v359_v8 = vadd.f32 %v357_v54, %v331_v13  ;;  %v360_v9 = vadd.f32 %v358_v55, %v331_v13 }
  0xbe   : > { %v449_v24 = vpop.permute.xlu0 %448 }
  0xbf   : > { %v363_v25 = vpop.permute.xlu1 %362  ;;  %v470_v50 = vmul.f32 %v465_v34, %v449_v24  ;;  %v471_v51 = vmul.f32 %v469_v35, %v449_v24 }
  0xc0   : > { %v383_v63 = vmul.f32 %v378_v41, %v363_v25  ;;  %v384_v0 = vmul.f32 %v382_v42, %v363_v25 }
  0xc2   : > { %v444_v38 = vpop.permute.xlu0 %443  ;;  %v385_v15 = vadd.f32 %v383_v63, %v359_v8  ;;  %v386_v16 = vadd.f32 %v384_v0, %v360_v9 }
  0xc3   : > { %v476_v43 = vpop.permute.xlu1 %475  ;;  %v472_v58 = vadd.f32 %v470_v50, %v444_v38  ;;  %v473_v59 = vadd.f32 %v471_v51, %v444_v38 }
  0xc4   : > { %v496_v60 = vmul.f32 %v491_v44, %v476_v43  ;;  %v497_v61 = vmul.f32 %v495_v45, %v476_v43 }
  0xc6   : > { %v498_v12 = vadd.f32 %v496_v60, %v472_v58  ;;  %v499_v14 = vadd.f32 %v497_v61, %v473_v59 }
  0xc7   : > { %v389_v62 = vpop.permute.xlu0 %388 }
  0xc8   : > { %v502_v1 = vpop.permute.xlu1 %501  ;;  %v409_v10 = vmul.f32 %v404_v56, %v389_v62  ;;  %v410_v11 = vmul.f32 %v408_v57, %v389_v62 }
  0xc9   : > { %v522_v4 = vmul.f32 %v517_v46, %v502_v1  ;;  %v523_v5 = vmul.f32 %v521_v47, %v502_v1 }
  0xca   : > { %v411_v23 = vadd.f32 %v409_v10, %v385_v15  ;;  %v412_v24 = vadd.f32 %v410_v11, %v386_v16 }
  0xcb   : > { %v524_v18 = vadd.f32 %v522_v4, %v498_v12  ;;  %v525_v19 = vadd.f32 %v523_v5, %v499_v14 }
  0xcc   : > { %v528_v17 = vpop.permute.xlu0 %527 }
  0xcd   : > { %v548_v20 = vmul.f32 %v543_v2, %v528_v17  ;;  %v549_v21 = vmul.f32 %v547_v3, %v528_v17  ;;  %v415_v22 = vpop.permute.xlu1 %414 }
  0xce   : > { %v435_v25 = vmul.f32 %v430_v6, %v415_v22  ;;  %v436_v26 = vmul.f32 %v434_v7, %v415_v22 }
  0xcf   : > { %v550_v27 = vadd.f32 %v548_v20, %v524_v18  ;;  %v551_v28 = vadd.f32 %v549_v21, %v525_v19 }
  0xd0   : > { %v437_v29 = vadd.f32 %v435_v25, %v411_v23  ;;  %v438_v13 = vadd.f32 %v436_v26, %v412_v24 }
  0xd1   : > { %v570_v40 = vrot.slane %v550_v27, 4  ;;  %v571_v42 = vrot.slane %v551_v28, 4 }
  0xd2   : > { %v552_v30 = vmul.f32 %v550_v27, %v437_v29  ;;  %v553_v31 = vmul.f32 %v551_v28, %v438_v13 }
  0xd4   : > { %v712_v32 = vmul.f32 -1.442695, %v552_v30  ;;  %v713_v33 = vmul.f32 -1.442695, %v553_v31 }
  0xd6   : > { %795 = vpow2.f32 %v712_v32 }
  0xd7   : > { %797 = vpow2.f32 %v713_v33 }
  0xe0   : > { %v796_v34 = vpop.eup %795 }
  0xe1   : > { %v798_v35 = vpop.eup %797  ;;  %v560_v36 = vadd.f32 1.0, %v796_v34 }
  0xe2   : > { %v561_v37 = vadd.f32 1.0, %v798_v35 }
  0xe3   : > { %799 = vrcp.f32 %v560_v36 }
  0xe4   : > { %801 = vrcp.f32 %v561_v37 }
  0xed   : > { %v800_v38 = vpop.eup %799 }
  0xee   : > { %v802_v39 = vpop.eup %801  ;;  %v566_v41 = vmul.f32 %v800_v38, %v437_v29 }
  0xef   : > { %v567_v43 = vmul.f32 %v802_v39, %v438_v13 }
  0xf0   : > { %v574_v44 = vadd.f32 %v570_v40, %v566_v41 }
  0xf1   : > { %v575_v45 = vadd.f32 %v571_v42, %v567_v43 }
  0xf3   : > { %v578_v46 = vcombine.low %v574_v44, %v575_v45 }
  0xf5   : > { %580 = vst [vmem:[%s311_s28] sm:$0xff] %v578_v46 }
  0xf6   : > { %846 = shalt.err (!%p843_p4)
}
  0xf7   : > { %s847_s30 = scalar_lea.hbm %s1105_s9, 128  ;;  %s851_s20 = scalar_lea.hbm %s1160_s6, 256 }
  0xf8   : > { %p848_p10 = scmp.ne.s32.totalorder %s1105_s9, %s847_s30  ;;  %p852_p2 = scmp.lt.u32.totalorder %s1105_s9, %s1160_s6 }
  0xf9   : > { %p853_p5 = scmp.lt.u32.totalorder %s851_s20, %s847_s30  ;;  %p855_p9 = scmp.lt.u32.totalorder %s847_s30, %s1105_s9 }
  0xfa   : > { %p849_p12 = pnand %p848_p10, %p1169_p11 }
  0xfb   : > { %p854_p8 = por %p853_p5, %p852_p2 }
  0xfc   : > { %p850_p1 = pneg %p849_p12 }
  0xfd   : > { %p856_p0 = por %p855_p9, %p854_p8 }
  0xff   : > { %p857_p7 = pnand %p856_p0, %p850_p1 }
 0x101   : > { %860 = shalt.err (!%p857_p7)
}
 0x102   : > { %724 = dma.vmem_to_hbm [thread:$0]  (%p1169_p11), %s1107_s15, 128, %s1105_s9, %s582_s17  }
 0x103 PF: > { %s610_s16 = sand.u32 1, %s895_s21   ;;  %p1170_p13 = scmp.ne.s32.totalorder %s1165_s12, 0 }
 0x104   : > { %p1171_p3 = scmp.ge.s32.totalorder %s915_s26, 2  ;;  %s611_s13 = scalar_lea.sflag [#allocation4], %s610_s16 }
 0x106   : > { %p731_p6 = pnand %p1171_p3, %p1170_p13 }
 0x108   : > { %890 = dma.done.wait (!%p731_p6), %s611_s13, 128  }
 0x109   : > { %892 = vsyncadd (!%p731_p6), %s611_s13, 4294967168  ;;  %s22_s26 = sadd.s32 1, %s915_s26   ;;  %s1172_s21 = smov %s899_s22 }
 0x10a   : > { %p19_p4 = scmp.ge.s32.totalorder %s22_s26, 4   ;;  %s1173_s22 = smov %s903_s23 }
 0x10b   : > { %s1174_s23 = smov %s1014_s11  ;;  %s1175_s24 = smov %s911_s25 }
 0x10c   : > { %s1176_s25 = smov %s1178_s29  ;;  %21 = sbr.rel (!%p19_p4) target bundleno = 6 (0x6), region = 92 }
 0x113   :  { %616 = vsyncpa [#allocation3], 1 }
 0x114   :  { %618 = vsyncpa [#allocation3 + $0x1], 1 }
 0x115   :  { %619 = vsyncpa [#allocation4], 1 }
 0x116   :  { %621 = vsyncpa [#allocation4 + $0x1], 1 }

</bundles_post_ra>
